<compile_context>
chip_gen: v7x
topology: tpu7x:2x2x1
jax: 0.10.0
libtpu: 0.0.40
codegen_flags: <defaults>
</compile_context>

<pallas_src>
import jax
import jax.numpy as jnp
from jax.experimental import pallas as pl
from jax.experimental.pallas import tpu as pltpu


def _round_up(n, m):
    return ((n + m - 1) // m) * m


def _make_cln_kernel(*, eps, channels, tile_t, total_t):
    """Build the cLN kernel with all config baked in as Python scalars."""
    eps = float(eps)
    c_f = float(channels)
    tile_t = int(tile_t)
    total_t = int(total_t)
    ragged = (total_t % tile_t) != 0

    def cln_kernel(x_ref, g_ref, b_ref, o_ref, carry_ref):
        # x_ref:      (1, C, tT) current time chunk of the current batch element
        # g_ref/b_ref:(C, 1)     gain / bias
        # carry_ref:  (2, 1)     running [cum_sum, cum_pow_sum] from previous chunks
        t_chunk = pl.program_id(1)

        @pl.when(t_chunk == 0)
        def _():
            carry_ref[...] = jnp.zeros_like(carry_ref)

        x = x_ref[0].astype(jnp.float32)                      # (C, tT)

        # Global time position of every lane in this chunk.
        lane = jax.lax.broadcasted_iota(jnp.int32, (1, tile_t), 1)
        t_pos = lane + t_chunk * tile_t                       # (1, tT) int32

        if ragged:
            # Zero the lanes past the real T so garbage in the boundary block can
            # never reach the reductions / carry (their outputs are dropped on
            # writeback anyway; this just keeps NaN/Inf out of the dead lanes).
            x = jnp.where(t_pos < total_t, x, 0.0)

        # Per-time-step channel sums, stacked as two sublanes.
        step_sum = jnp.sum(x, axis=0, keepdims=True)          # (1, tT)
        step_pow = jnp.sum(x * x, axis=0, keepdims=True)      # (1, tT)
        scan = jnp.concatenate([step_sum, step_pow], axis=0)  # (2, tT)

        # Inclusive in-chunk prefix sum along lanes: Hillis-Steele log-step scan
        # (shift-in-zeros + add).  O(tT log tT) XLU/VPU work, no MXU, no (tT,tT)
        # triangular weight matrix resident in VMEM.
        shift = 1
        while shift < tile_t:
            shifted = jnp.concatenate(
                [jnp.zeros_like(scan[:, :shift]), scan[:, : tile_t - shift]],
                axis=1,
            )
            scan = scan + shifted
            shift *= 2

        # Add carry from previous chunks; update carry with the new running totals.
        cum = scan + carry_ref[...]                           # (2, tT)
        carry_ref[...] = cum[:, tile_t - 1 : tile_t]          # (2, 1)

        cum_sum = cum[0:1, :]                                 # (1, tT)
        cum_pow = cum[1:2, :]                                 # (1, tT)

        # entry_cnt = C * (global_t + 1); only a (1, tT) divide.
        entry_cnt = c_f * (t_pos.astype(jnp.float32) + 1.0)
        inv_cnt = 1.0 / entry_cnt

        cum_mean = cum_sum * inv_cnt
        cum_var = (cum_pow - 2.0 * cum_mean * cum_sum) * inv_cnt + cum_mean * cum_mean
        inv_std = jax.lax.rsqrt(cum_var + eps)                # EUP, not sqrt + divide

        out = (x - cum_mean) * inv_std * g_ref[...] + b_ref[...]
        o_ref[0] = out.astype(o_ref.dtype)

    return cln_kernel


def cln_pallas(x, gain, bias, eps=1e-8, tile_t=None):
    """x: (B, C, T); gain, bias: (1, C, 1) (PyTorch parameter shapes)."""
    B, C, T = x.shape
    itemsize = x.dtype.itemsize

    if tile_t is None:
        # HBM-bound kernel: pick the largest lane-dense time tile whose
        # double-buffered x + out blocks fit a conservative streaming budget that
        # is safe on every generation (v7x has only 64 MiB VMEM per TensorCore).
        stream_budget = 16 * 1024 * 1024          # 2 arrays x 2 buffers
        bytes_per_t = 2 * 2 * C * itemsize
        cap = max(128, ((stream_budget // bytes_per_t) // 128) * 128)
        tile_t = min(_round_up(T, 128), 2048, cap)
    tile_t = int(tile_t)
    assert tile_t % 128 == 0, "time tile must be lane-dense (multiple of 128)"

    nT = pl.cdiv(T, tile_t)

    g2 = gain.reshape(C, 1).astype(jnp.float32)
    b2 = bias.reshape(C, 1).astype(jnp.float32)

    kernel = _make_cln_kernel(eps=eps, channels=C, tile_t=tile_t, total_t=T)

    # Explicit scoped-VMEM limit sized to the chosen tiles: double-buffered x/out
    # blocks + in-kernel f32 temporaries + headroom, capped below v7x's 64 MiB.
    vmem_est = (2 * 2 * C * tile_t * itemsize) + 6 * C * tile_t * 4 + (1 << 20)
    vmem_limit = int(min(max(vmem_est, 32 << 20), 48 << 20))

    out = pl.pallas_call(
        kernel,
        out_shape=jax.ShapeDtypeStruct((B, C, T), x.dtype),
        grid_spec=pltpu.PrefetchScalarGridSpec(
            num_scalar_prefetch=0,
            grid=(B, nT),
            in_specs=[
                pl.BlockSpec((1, C, tile_t), lambda b, t: (b, 0, t)),  # x chunk
                pl.BlockSpec((C, 1), lambda b, t: (0, 0)),             # gain
                pl.BlockSpec((C, 1), lambda b, t: (0, 0)),             # bias
            ],
            out_specs=pl.BlockSpec((1, C, tile_t), lambda b, t: (b, 0, t)),
            scratch_shapes=[pltpu.VMEM((2, 1), jnp.float32)],          # running-sum carry
        ),
        compiler_params=pltpu.CompilerParams(
            dimension_semantics=("parallel", "arbitrary"),
            vmem_limit_bytes=vmem_limit,
        ),
    )(x, g2, b2)
    return out


def cln_reference(x, gain, bias, eps=1e-8):
    """Pure-JAX reference mirroring the PyTorch forward exactly."""
    B, C, T = x.shape
    xf = x.astype(jnp.float32)
    step_sum = xf.sum(axis=1)              # (B, T)
    step_pow_sum = (xf ** 2).sum(axis=1)   # (B, T)
    cum_sum = jnp.cumsum(step_sum, axis=1)
    cum_pow_sum = jnp.cumsum(step_pow_sum, axis=1)
    entry_cnt = jnp.arange(C, C * (T + 1), C, dtype=jnp.float32)[None, :]  # (1, T)
    cum_mean = cum_sum / entry_cnt
    cum_var = (cum_pow_sum - 2 * cum_mean * cum_sum) / entry_cnt + cum_mean ** 2
    cum_std = jnp.sqrt(cum_var + eps)
    xn = (xf - cum_mean[:, None, :]) / cum_std[:, None, :]
    return (xn * gain.astype(jnp.float32) + bias.astype(jnp.float32)).astype(x.dtype)


if __name__ == "__main__":
    # Small shapes consistent with the module: batch=2, channels(dimension)=4, time=16.
    B, C, T = 2, 4, 16
    key = jax.random.PRNGKey(0)
    x = jax.random.normal(key, (B, C, T), dtype=jnp.float32)

    # Parameter init matching cLN.__init__: gain=ones, bias=zeros.
    gain = jnp.ones((1, C, 1), dtype=jnp.float32)
    bias = jnp.zeros((1, C, 1), dtype=jnp.float32)

    out = jax.block_until_ready(cln_pallas(x, gain, bias, eps=1e-8))
    ref = cln_reference(x, gain, bias, eps=1e-8)
    assert out.shape == (B, C, T)
    assert jnp.allclose(out, ref, atol=1e-5, rtol=1e-5), "mismatch vs reference"

    # Multi-chunk + ragged-tail check: T spans three 128-lane time tiles and is not
    # a multiple of the tile, exercising the cross-chunk carry and the tail mask
    # (no host-side pad/slice any more).  Non-trivial gain/bias too.
    B2, C2, T2 = 2, 8, 300
    x2 = jax.random.normal(jax.random.PRNGKey(1), (B2, C2, T2), dtype=jnp.float32)
    g2 = 0.5 + jax.random.uniform(jax.random.PRNGKey(2), (1, C2, 1), dtype=jnp.float32)
    b2 = 0.1 * jax.random.normal(jax.random.PRNGKey(3), (1, C2, 1), dtype=jnp.float32)
    out2 = jax.block_until_ready(cln_pallas(x2, g2, b2, eps=1e-8, tile_t=128))
    ref2 = cln_reference(x2, g2, b2, eps=1e-8)
    assert out2.shape == (B2, C2, T2)
    assert jnp.allclose(out2, ref2, atol=1e-4, rtol=1e-4), "mismatch vs reference (chunked)"

    print("KERNEL_OK")
</pallas_src>

<mosaic_0001>
module attributes {stable_mosaic.version = 11 : i64} {
  func.func @cln_kernel(%arg0: i32, %arg1: i32, %arg2: memref<1x4x128xf32, #tpu.memory_space<vmem>>, %arg3: memref<4x1xf32, #tpu.memory_space<vmem>>, %arg4: memref<4x1xf32, #tpu.memory_space<vmem>>, %arg5: memref<1x4x128xf32, #tpu.memory_space<vmem>>, %arg6: memref<2x1xf32, #tpu.memory_space<vmem>>) attributes {dimension_semantics = [#tpu.dimension_semantics<parallel>, #tpu.dimension_semantics<arbitrary>], iteration_bounds = array<i64: 2, 1>, scalar_prefetch = 0 : i64, scratch_operands = 1 : i64, tpu.core_type = #tpu.core_type<tc>, window_params = [{transform_indices = @transform_0, window_bounds = array<i64: 1, 4, 128>}, {pipeline_mode = #tpu.pipeline_mode<synchronous>, transform_indices = @transform_1, window_bounds = array<i64: 4, 1>}, {pipeline_mode = #tpu.pipeline_mode<synchronous>, transform_indices = @transform_2, window_bounds = array<i64: 4, 1>}, {transform_indices = @transform_3, window_bounds = array<i64: 1, 4, 128>}]} {
    %c0_i32 = arith.constant 0 : i32
    %0 = arith.cmpi eq, %arg1, %c0_i32 : i32
    %1 = arith.extui %0 : i1 to i32
    %c0_i32_0 = arith.constant 0 : i32
    %2 = arith.cmpi ne, %1, %c0_i32_0 : i32
    scf.if %2 {
      %cst_28 = arith.constant 0.000000e+00 : f32
      %87 = vector.broadcast %cst_28 : f32 to vector<2x1xf32>
      %c0_29 = arith.constant 0 : index
      %c0_30 = arith.constant 0 : index
      %88 = vector.load %arg6[%c0_29, %c0_30] : memref<2x1xf32, #tpu.memory_space<vmem>>, vector<2x1xf32>
      tpu.vector_store %arg6[%c0_29, %c0_30], %87 {strides = array<i32>} : memref<2x1xf32, #tpu.memory_space<vmem>>, vector<2x1xf32>,
    } else {
    }
    %c0 = arith.constant 0 : index
    %c0_1 = arith.constant 0 : index
    %c0_2 = arith.constant 0 : index
    %3 = vector.load %arg2[%c0, %c0_1, %c0_2] : memref<1x4x128xf32, #tpu.memory_space<vmem>>, vector<1x4x128xf32>
    %4 = vector.shape_cast %3 : vector<1x4x128xf32> to vector<4x128xf32>
    %5 = tpu.iota {dimensions = array<i32: 1>} : vector<1x128xi32>
    %c128_i32 = arith.constant 128 : i32
    %6 = arith.muli %arg1, %c128_i32 : i32
    %7 = vector.broadcast %6 : i32 to vector<1x128xi32>
    %8 = arith.addi %5, %7 : vector<1x128xi32>
    %c16_i32 = arith.constant 16 : i32
    %9 = vector.broadcast %c16_i32 : i32 to vector<1x128xi32>
    %10 = arith.cmpi slt, %8, %9 : vector<1x128xi32>
    %cst = arith.constant 0.000000e+00 : f32
    %11 = vector.shape_cast %10 : vector<1x128xi1> to vector<1x128xi1>
    %12 = vector.broadcast %11 : vector<1x128xi1> to vector<4x128xi1>
    %13 = vector.broadcast %cst : f32 to vector<4x128xf32>
    %14 = arith.select %12, %4, %13 : vector<4x128xi1>, vector<4x128xf32>
    %cst_3 = arith.constant dense<0.000000e+00> : vector<128xf32>
    %15 = vector.multi_reduction <add>, %14, %cst_3 [0] : vector<4x128xf32> to vector<128xf32>
    %16 = vector.shape_cast %15 : vector<128xf32> to vector<1x128xf32>
    %17 = arith.mulf %14, %14 : vector<4x128xf32>
    %cst_4 = arith.constant dense<0.000000e+00> : vector<128xf32>
    %18 = vector.multi_reduction <add>, %17, %cst_4 [0] : vector<4x128xf32> to vector<128xf32>
    %19 = vector.shape_cast %18 : vector<128xf32> to vector<1x128xf32>
    %20 = tpu.concatenate %16, %19 in 0 : vector<1x128xf32>, vector<1x128xf32> -> vector<2x128xf32>
    %cst_5 = arith.constant 0.000000e+00 : f32
    %21 = vector.broadcast %cst_5 : f32 to vector<2x1xf32>
    %22 = vector.extract_strided_slice %20 {offsets = [0, 0], sizes = [2, 127], strides = [1, 1]} : vector<2x128xf32> to vector<2x127xf32>
    %23 = tpu.concatenate %21, %22 in 1 : vector<2x1xf32>, vector<2x127xf32> -> vector<2x128xf32>
    %24 = arith.addf %20, %23 : vector<2x128xf32>
    %cst_6 = arith.constant 0.000000e+00 : f32
    %25 = vector.broadcast %cst_6 : f32 to vector<2x2xf32>
    %26 = vector.extract_strided_slice %24 {offsets = [0, 0], sizes = [2, 126], strides = [1, 1]} : vector<2x128xf32> to vector<2x126xf32>
    %27 = tpu.concatenate %25, %26 in 1 : vector<2x2xf32>, vector<2x126xf32> -> vector<2x128xf32>
    %28 = arith.addf %24, %27 : vector<2x128xf32>
    %cst_7 = arith.constant 0.000000e+00 : f32
    %29 = vector.broadcast %cst_7 : f32 to vector<2x4xf32>
    %30 = vector.extract_strided_slice %28 {offsets = [0, 0], sizes = [2, 124], strides = [1, 1]} : vector<2x128xf32> to vector<2x124xf32>
    %31 = tpu.concatenate %29, %30 in 1 : vector<2x4xf32>, vector<2x124xf32> -> vector<2x128xf32>
    %32 = arith.addf %28, %31 : vector<2x128xf32>
    %cst_8 = arith.constant 0.000000e+00 : f32
    %33 = vector.broadcast %cst_8 : f32 to vector<2x8xf32>
    %34 = vector.extract_strided_slice %32 {offsets = [0, 0], sizes = [2, 120], strides = [1, 1]} : vector<2x128xf32> to vector<2x120xf32>
    %35 = tpu.concatenate %33, %34 in 1 : vector<2x8xf32>, vector<2x120xf32> -> vector<2x128xf32>
    %36 = arith.addf %32, %35 : vector<2x128xf32>
    %cst_9 = arith.constant 0.000000e+00 : f32
    %37 = vector.broadcast %cst_9 : f32 to vector<2x16xf32>
    %38 = vector.extract_strided_slice %36 {offsets = [0, 0], sizes = [2, 112], strides = [1, 1]} : vector<2x128xf32> to vector<2x112xf32>
    %39 = tpu.concatenate %37, %38 in 1 : vector<2x16xf32>, vector<2x112xf32> -> vector<2x128xf32>
    %40 = arith.addf %36, %39 : vector<2x128xf32>
    %cst_10 = arith.constant 0.000000e+00 : f32
    %41 = vector.broadcast %cst_10 : f32 to vector<2x32xf32>
    %42 = vector.extract_strided_slice %40 {offsets = [0, 0], sizes = [2, 96], strides = [1, 1]} : vector<2x128xf32> to vector<2x96xf32>
    %43 = tpu.concatenate %41, %42 in 1 : vector<2x32xf32>, vector<2x96xf32> -> vector<2x128xf32>
    %44 = arith.addf %40, %43 : vector<2x128xf32>
    %cst_11 = arith.constant 0.000000e+00 : f32
    %45 = vector.broadcast %cst_11 : f32 to vector<2x64xf32>
    %46 = vector.extract_strided_slice %44 {offsets = [0, 0], sizes = [2, 64], strides = [1, 1]} : vector<2x128xf32> to vector<2x64xf32>
    %47 = tpu.concatenate %45, %46 in 1 : vector<2x64xf32>, vector<2x64xf32> -> vector<2x128xf32>
    %48 = arith.addf %44, %47 : vector<2x128xf32>
    %c0_12 = arith.constant 0 : index
    %c0_13 = arith.constant 0 : index
    %49 = vector.load %arg6[%c0_12, %c0_13] : memref<2x1xf32, #tpu.memory_space<vmem>>, vector<2x1xf32>
    %50 = vector.broadcast %49 : vector<2x1xf32> to vector<2x128xf32>
    %51 = arith.addf %48, %50 : vector<2x128xf32>
    %52 = vector.extract_strided_slice %51 {offsets = [0, 127], sizes = [2, 1], strides = [1, 1]} : vector<2x128xf32> to vector<2x1xf32>
    %c0_14 = arith.constant 0 : index
    %c0_15 = arith.constant 0 : index
    %53 = vector.load %arg6[%c0_14, %c0_15] : memref<2x1xf32, #tpu.memory_space<vmem>>, vector<2x1xf32>
    tpu.vector_store %arg6[%c0_14, %c0_15], %52 {strides = array<i32>} : memref<2x1xf32, #tpu.memory_space<vmem>>, vector<2x1xf32>,
    %54 = vector.extract_strided_slice %51 {offsets = [0, 0], sizes = [1, 128], strides = [1, 1]} : vector<2x128xf32> to vector<1x128xf32>
    %55 = vector.extract_strided_slice %51 {offsets = [1, 0], sizes = [1, 128], strides = [1, 1]} : vector<2x128xf32> to vector<1x128xf32>
    %56 = arith.sitofp %8 : vector<1x128xi32> to vector<1x128xf32>
    %cst_16 = arith.constant 1.000000e+00 : f32
    %57 = vector.broadcast %cst_16 : f32 to vector<1x128xf32>
    %58 = arith.addf %56, %57 : vector<1x128xf32>
    %cst_17 = arith.constant 4.000000e+00 : f32
    %59 = vector.broadcast %cst_17 : f32 to vector<1x128xf32>
    %60 = arith.mulf %59, %58 : vector<1x128xf32>
    %cst_18 = arith.constant 1.000000e+00 : f32
    %61 = vector.broadcast %cst_18 : f32 to vector<1x128xf32>
    %62 = arith.divf %61, %60 : vector<1x128xf32>
    %63 = arith.mulf %54, %62 : vector<1x128xf32>
    %cst_19 = arith.constant 2.000000e+00 : f32
    %64 = vector.broadcast %cst_19 : f32 to vector<1x128xf32>
    %65 = arith.mulf %64, %63 : vector<1x128xf32>
    %66 = arith.mulf %65, %54 : vector<1x128xf32>
    %67 = arith.subf %55, %66 : vector<1x128xf32>
    %68 = arith.mulf %67, %62 : vector<1x128xf32>
    %69 = arith.mulf %63, %63 : vector<1x128xf32>
    %70 = arith.addf %68, %69 : vector<1x128xf32>
    %cst_20 = arith.constant 9.99999993E-9 : f32
    %71 = vector.broadcast %cst_20 : f32 to vector<1x128xf32>
    %72 = arith.addf %70, %71 : vector<1x128xf32>
    %73 = math.rsqrt %72 : vector<1x128xf32>
    %74 = vector.broadcast %63 : vector<1x128xf32> to vector<4x128xf32>
    %75 = arith.subf %14, %74 : vector<4x128xf32>
    %76 = vector.broadcast %73 : vector<1x128xf32> to vector<4x128xf32>
    %77 = arith.mulf %75, %76 : vector<4x128xf32>
    %c0_21 = arith.constant 0 : index
    %c0_22 = arith.constant 0 : index
    %78 = vector.load %arg3[%c0_21, %c0_22] : memref<4x1xf32, #tpu.memory_space<vmem>>, vector<4x1xf32>
    %79 = vector.broadcast %78 : vector<4x1xf32> to vector<4x128xf32>
    %80 = arith.mulf %77, %79 : vector<4x128xf32>
    %c0_23 = arith.constant 0 : index
    %c0_24 = arith.constant 0 : index
    %81 = vector.load %arg4[%c0_23, %c0_24] : memref<4x1xf32, #tpu.memory_space<vmem>>, vector<4x1xf32>
    %82 = vector.broadcast %81 : vector<4x1xf32> to vector<4x128xf32>
    %83 = arith.addf %80, %82 : vector<4x128xf32>
    %c0_25 = arith.constant 0 : index
    %c0_26 = arith.constant 0 : index
    %c0_27 = arith.constant 0 : index
    %84 = vector.load %arg5[%c0_25, %c0_26, %c0_27] : memref<1x4x128xf32, #tpu.memory_space<vmem>>, vector<1x4x128xf32>
    %85 = vector.shape_cast %84 : vector<1x4x128xf32> to vector<4x128xf32>
    %86 = vector.shape_cast %83 : vector<4x128xf32> to vector<1x4x128xf32>
    tpu.vector_store %arg5[%c0_25, %c0_26, %c0_27], %86 {strides = array<i32>} : memref<1x4x128xf32, #tpu.memory_space<vmem>>, vector<1x4x128xf32>,
    return
  }
  func.func @transform_0(%arg0: i32, %arg1: i32) -> (i32, i32, i32) {
    %c0_i32 = arith.constant 0 : i32
    %c0_i32_0 = arith.constant 0 : i32
    return %arg0, %c0_i32, %arg1 : i32, i32, i32
  }
  func.func @transform_1(%arg0: i32, %arg1: i32) -> (i32, i32) {
    %c0_i32 = arith.constant 0 : i32
    %c0_i32_0 = arith.constant 0 : i32
    %c0_i32_1 = arith.constant 0 : i32
    return %c0_i32, %c0_i32_0 : i32, i32
  }
  func.func @transform_2(%arg0: i32, %arg1: i32) -> (i32, i32) {
    %c0_i32 = arith.constant 0 : i32
    %c0_i32_0 = arith.constant 0 : i32
    %c0_i32_1 = arith.constant 0 : i32
    return %c0_i32, %c0_i32_0 : i32, i32
  }
  func.func @transform_3(%arg0: i32, %arg1: i32) -> (i32, i32, i32) {
    %c0_i32 = arith.constant 0 : i32
    %c0_i32_0 = arith.constant 0 : i32
    return %arg0, %c0_i32, %arg1 : i32, i32, i32
  }
}

</mosaic_0001>

<bundles_post_ra>
// kernel: tpu_custom_call.1
= control target key start
LH: loop header
LB: loop body
LE: loop exit
PB: predicated region body
PF: predicated region fallthrough
CT: control target
= control target key end

     0   :  { %8 = vsyncpa [#allocation4], 0  ;;  %s743_s0 = inlined_call_operand.vmem [shape: f32[2,4,16], index: 0, kind: input, shape index: {}]   ;;  %s744_s1 = inlined_call_operand.vmem [shape: f32[4,1], index: 1, kind: input, shape index: {}]   ;;  %s745_s2 = inlined_call_operand.vmem [shape: f32[4,1], index: 2, kind: input, shape index: {}]   ;;  %s746_s3 = inlined_call_operand.hbm [shape: f32[2,4,16], index: 3, kind: output, shape index: {}]  }
   0x1   :  { %10 = vsyncpa [#allocation4 + $0x1], 0  ;;  %s609_s12 = smov 0   ;;  %s611_s13 = smov 0  }
   0x2   :  { %s613_s14 = smov 0   ;;  %s615_s15 = smov 0  }
   0x3   :  { %s617_s16 = smov 0   ;;  %s619_s17 = smov 0  }
   0x4 LB: > { %s418_s18 = sadd.s32 4294967295, %s577_s17   ;;  %s419_s19 = sadd.s32 4294967294, %s577_s17   ;;  %s577_s17 = sphi %s619_s17, %s16_s17   ;;  %s573_s16 = sphi %s617_s16, %s753_s16   ;;  %s569_s15 = sphi %s615_s15, %s752_s15   ;;  %s565_s14 = sphi %s613_s14, %s751_s14   ;;  %s561_s13 = sphi %s611_s13, %s750_s13   ;;  %s557_s12 = sphi %s609_s12, %s749_s12  }
   0x5   : > { %s28_s20 = sadd.s32 1, %s573_s16  ;;  %s107_s21 = sadd.s32 1, %s565_s14 }
   0x6   : > { %p30_p0 = scmp.ge.s32.totalorder %s28_s20, 2  ;;  %p117_p1 = scmp.ne.s32.totalorder %s565_s14, %s561_s13 }
   0x7   : > { %p118_p2 = scmp.eq.s32.totalorder %s418_s18, 1  ;;  %p123_p3 = scmp.ne.s32.totalorder %s561_s13, %s557_s12 }
   0x8   : > { %s755_s20 = smov (%p30_p0, %s28_s20), 0  ;;  %p124_p5 = scmp.eq.s32.totalorder %s419_s19, 1 }
   0x9   : > { %p649_p4 = por %p118_p2, %p117_p1  ;;  %s102_s23 = ssub.s32 %s573_s16, %s755_s20 }
   0xa   : > { %p422_p6 = scmp.ge.s32.totalorder %s577_s17, 1  ;;  %p105_p7 = scmp.eq.s32.totalorder %s102_s23, 0 }
   0xb   : > { %p656_p8 = por %p124_p5, %p123_p3  ;;  %p158_p9 = scmp.lt.s32.totalorder %s577_s17, 3 }
   0xc   : > { %s662_s25 = scalar_select %p105_p7, %s565_s14, %s107_s21  }
   0xd   : > { %p159_p10 = pnand %p422_p6, %p158_p9 }
   0xe   : > { %p184_p11 = scmp.lt.s32.totalorder (!%p159_p10), %s569_s15, 1  ;;  %v198_v0 = vlaneseq (!%p159_p10)  ;;  %vm207_vm1 = vcmask (!%p159_p10), 1043456   ;;  %vm223_vm2 = vcmask (!%p159_p10), 1040384   ;;  %s579_s4 = smov (!%p159_p10), 1   ;;  %vm229_vm3 = vcmask (!%p159_p10), 7168  }
   0xf   : > { %162 = sbr.rel (%p159_p10) target bundleno = 988 (0x3dc), region = 32  ;;  %s580_s5 = smov (!%p159_p10), 2   ;;  %vm236_vm4 = vcmask (!%p159_p10), 15360   ;;  %vm243_vm5 = vcmask (!%p159_p10), 31744   ;;  %vm195_vm6 = vcmask (!%p159_p10), 1024   ;;  %v583_v29 = vmov (!%p159_p10), 0  }
  0x10   : > { %v667_v1 = vand.u32 (!%p159_p10), 127, %v198_v0  ;;  %s581_s6 = smov (!%p159_p10), 4   ;;  %s582_s7 = smov (!%p159_p10), 8   ;;  %493 = vset.pattern.permute.xlu0 (!%p159_p10), %v583_v29  ;;  %v584_v30 = vmov (!%p159_p10), 0.0   ;;  %494 = vset.pattern.permute.xlu1 (!%p159_p10), %v583_v29  ;;  %vm250_vm7 = vcmask (!%p159_p10), 64512   ;;  %vm257_vm8 = vcmask (!%p159_p10), 130048  }
  0x11   : > { %196 = vst.msk [vmem:[#allocation2] sm:$0x3] (!%p159_p10), %vm195_vm6, %v584_v30  ;;  %s585_s8 = smov (!%p159_p10), 16   ;;  %v324_v35 = vld [vmem:[%s745_s2] sm:$0xf] (!%p159_p10)  ;;  %s586_s11 = smov (!%p159_p10), 32  }
  0x12   : > { %vm203_vm0 = vcmp.lt.s32.totalorder (!%p159_p10), %v667_v1, 16  ;;  %vm264_vm9 = vcmask (!%p159_p10), 261120   ;;  %s587_s18 = smov (!%p159_p10), 64   ;;  %v317_v42 = vld [vmem:[%s744_s1] sm:$0xf] (!%p159_p10)  ;;  %v287_v43 = vcvt.s32.f32 (!%p159_p10), %v667_v1  ;;  %vm271_vm10 = vcmask (!%p159_p10), 523264  }
  0x13   : > { %v308_v62 = vshrl.u32 (!%p159_p10), %v198_v0, 7  ;;  %s181_s23 = sand.u32 (!%p159_p10), 1, %s561_s13  }
  0x14   : > { %v288_v44 = vadd.f32 (!%p159_p10), 1.0, %v287_v43 }
  0x15   : > { %v309_v63 = vsub.s32 (!%p159_p10), 0, %v308_v62  ;;  %v314_v1 = vsub.s32 (!%p159_p10), 1, %v308_v62 }
  0x16   : > { %s185_s26 = scalar_select %p184_p11, %s569_s15, 1  ;;  %v289_v45 = vmul.f32 4.0, %v288_v44 }
  0x18   : > { %s424_s27 = sshll.u32 %s185_s26, 2  ;;  %v274_v34 = vld [vmem:[#allocation2] sm:$0x3]  ;;  %495 = vrcp.f32 %v289_v45  ;;  %s423_s26 = sshll.u32 %s181_s23, 2 }
  0x19   : > { %s190_s30 = scalar_lea.vmem %s743_s0, %s424_s27  ;;  %s426_s27 = sshll.u32 %s569_s15, 6 }
  0x1a   : > { %v197_v2 = vld [vmem:[%s190_s30] sm:$0xf]  ;;  %s183_s28 = scalar_lea.vmem [#allocation3], %s423_s26  ;;  %s588_s15 = smov [#allocation3]  }
  0x1b   : > { %v673_v3 = vsel %vm203_vm0, %v197_v2, 0.0  ;;  %s347_s29 = sshll.u32 %s183_s28, 4  ;;  %s697_s29 = int_to_ptr.vmem [resolvable:$true] %s347_s29 }
  0x1c   : > { %v208_v4 = vsel %vm207_vm1, %v673_v3, 0.0  ;;  %v215_v5 = vmul.f32 %v673_v3, %v673_v3 }
  0x1d   : > { %v209_v6 = vrot.slane %v208_v4, 4 }
  0x1e   : > { %v216_v7 = vsel %vm207_vm1, %v215_v5, 0.0 }
  0x1f   : > { %v210_v8 = vadd.f32 %v209_v6, %v208_v4  ;;  %v217_v9 = vrot.slane %v216_v7, 4 }
  0x21   : > { %v211_v10 = vrot.slane %v210_v8, 2  ;;  %v218_v11 = vadd.f32 %v217_v9, %v216_v7 }
  0x22   : > { %v496_v49 = vpop.eup %495 }
  0x23   : > { %v212_v12 = vadd.f32 %v211_v10, %v210_v8  ;;  %v219_v13 = vrot.slane %v218_v11, 2 }
  0x25   : > { %v213_v14 = vrot.slane %v212_v12, 1  ;;  %v220_v15 = vadd.f32 %v219_v13, %v218_v11 }
  0x27   : > { %v214_v16 = vadd.f32 %v213_v14, %v212_v12  ;;  %v221_v17 = vrot.slane %v220_v15, 1 }
  0x29   : > { %v222_v18 = vadd.f32 %v221_v17, %v220_v15 }
  0x2b   : > { %v224_v19 = vsel %vm223_vm2, %v214_v16, %v222_v18 }
  0x2c   : > { %226 = vrot.lane.b32.xlu0 %v224_v19, %s579_s4 }
  0x9e   : > { %v227_v20 = vpop.permute.xlu0 %226 }
  0x9f   : > { %v230_v21 = vsel %vm229_vm3, 0.0, %v227_v20 }
  0xa0   : > { %v231_v22 = vadd.f32 %v230_v21, %v224_v19 }
  0xa2   : > { %233 = vrot.lane.b32.xlu0 %v231_v22, %s580_s5  ;;  %s695_s5 = scalar_lea.hbm %s746_s3, %s426_s27 }
 0x114   : > { %v234_v23 = vpop.permute.xlu0 %233 }
 0x115   : > { %v237_v24 = vsel %vm236_vm4, 0.0, %v234_v23 }
 0x116   : > { %v238_v25 = vadd.f32 %v237_v24, %v231_v22 }
 0x118   : > { %240 = vrot.lane.b32.xlu1 %v238_v25, %s581_s6  ;;  %s333_s6 = scalar_lea.sflag [#allocation4], %s181_s23 }
 0x18a   : > { %v241_v26 = vpop.permute.xlu1 %240 }
 0x18b   : > { %v244_v27 = vsel %vm243_vm5, 0.0, %v241_v26 }
 0x18c   : > { %v245_v28 = vadd.f32 %v244_v27, %v238_v25 }
 0x18e   : > { %247 = vrot.lane.b32.xlu1 %v245_v28, %s582_s7  ;;  %s499_s7 = scalar_lea.vmem %s697_s29, 64 }
 0x18f   : > { %p500_p12 = scmp.ne.s32.totalorder %s697_s29, %s499_s7 }
 0x191   : > { %p501_p13 = pnand %p500_p12, %p649_p4 }
 0x193   : > { %p502_p0 = pneg %p501_p13 }
 0x200   : > { %v248_v31 = vpop.permute.xlu1 %247 }
 0x201   : > { %v251_v32 = vsel %vm250_vm7, 0.0, %v248_v31 }
 0x202   : > { %v252_v33 = vadd.f32 %v251_v32, %v245_v28 }
 0x204   : > { %254 = vrot.lane.b32.xlu0 %v252_v33, %s585_s8  ;;  %s503_s8 = sshll.u32 %s588_s15, 4  ;;  %s504_s8 = int_to_ptr.vmem [resolvable:$false] %s503_s8 }
 0x205   : > { %s505_s9 = scalar_lea.vmem %s504_s8, 128  ;;  %p506_p1 = scmp.lt.s32.totalorder %s697_s29, %s504_s8 }
 0x206   : > { %p507_p2 = scmp.lt.s32.totalorder %s505_s9, %s499_s7 }
 0x208   : > { %277 = vperm.xlu0 %493, %v274_v34   ;;  %p508_p3 = por %p507_p2, %p506_p1 }
 0x20a   : > { %p509_p5 = pnand %p508_p3, %p502_p0 }
 0x20c   : > { %327 = vperm.xlu0 %493, %v324_v35  }
 0x276   : > { %v255_v36 = vpop.permute.xlu0 %254 }
 0x277   : > { %v258_v37 = vsel %vm257_vm8, 0.0, %v255_v36 }
 0x278   : > { %v259_v38 = vadd.f32 %v258_v37, %v252_v33 }
 0x27a   : > { %261 = vrot.lane.b32.xlu1 %v259_v38, %s586_s11 }
 0x287   : > { %v278_v50 = vpop.permute.xlu0 %277 }
 0x28b   : > { %v328_v10 = vpop.permute.xlu0 %327 }
 0x2ec   : > { %v262_v39 = vpop.permute.xlu1 %261 }
 0x2ed   : > { %v265_v40 = vsel %vm264_vm9, 0.0, %v262_v39 }
 0x2ee   : > { %v266_v41 = vadd.f32 %v265_v40, %v259_v38 }
 0x2f0   : > { %268 = vrot.lane.b32.xlu1 %v266_v41, %s587_s18 }
 0x2f4   : > { %320 = vperm.xlu1 %494, %v317_v42  }
 0x362   : > { %v269_v46 = vpop.permute.xlu1 %268 }
 0x363   : > { %v272_v47 = vsel %vm271_vm10, 0.0, %v269_v46 }
 0x364   : > { %v273_v48 = vadd.f32 %v272_v47, %v266_v41 }
 0x366   : > { %v280_v51 = vadd.f32 %v278_v50, %v273_v48 }
 0x368   : > { %282 = vrot.lane.b32.xlu1 %v280_v51, %s579_s4  ;;  %v292_v52 = vmul.f32 %v496_v49, %v280_v51 }
 0x36a   : > { %v293_v53 = vmul.f32 2.0, %v292_v52  ;;  %v300_v56 = vmul.f32 %v292_v52, %v292_v52  ;;  %v310_v2 = vrot.slane %v292_v52, %v309_v63 }
 0x36c   : > { %v294_v54 = vmul.f32 %v293_v53, %v280_v51  ;;  %v302_v59 = vrot.slane %v300_v56, 7  ;;  %v311_v5 = vsub.f32 %v673_v3, %v310_v2 }
 0x36e   : > { %v296_v55 = vrot.slane %v294_v54, 7 }
 0x370   : > { %v298_v57 = vsub.f32 %v280_v51, %v296_v55 }
 0x372   : > { %v299_v58 = vmul.f32 %v496_v49, %v298_v57 }
 0x373   : > { %v321_v7 = vpop.permute.xlu1 %320 }
 0x374   : > { %v304_v60 = vadd.f32 %v302_v59, %v299_v58 }
 0x376   : > { %v305_v61 = vadd.f32 1e-08, %v304_v60 }
 0x378   : > { %497 = vrsqrt.f32 %v305_v61 }
 0x382   : > { %v498_v4 = vpop.eup %497 }
 0x383   : > { %v315_v6 = vrot.slane %v498_v4, %v314_v1 }
 0x385   : > { %v316_v8 = vmul.f32 %v315_v6, %v311_v5 }
 0x387   : > { %v323_v9 = vmul.f32 %v321_v7, %v316_v8 }
 0x389   : > { %v330_v11 = vadd.f32 %v328_v10, %v323_v9 }
 0x38b   : > { %331 = vst [vmem:[%s183_s28] sm:$0xf] %v330_v11 }
 0x38c   : > { %512 = shalt.err (!%p509_p5)
}
 0x38d   : > { %s513_s10 = scalar_lea.hbm %s695_s5, 64  ;;  %s517_s19 = scalar_lea.hbm %s746_s3, 128 }
 0x38e   : > { %p514_p6 = scmp.ne.s32.totalorder %s695_s5, %s513_s10  ;;  %p518_p10 = scmp.lt.u32.totalorder %s695_s5, %s746_s3 }
 0x38f   : > { %p519_p11 = scmp.lt.u32.totalorder %s517_s19, %s513_s10  ;;  %p521_p13 = scmp.lt.u32.totalorder %s513_s10, %s695_s5 }
 0x390   : > { %p515_p7 = pnand %p514_p6, %p649_p4 }
 0x391   : > { %p520_p12 = por %p519_p11, %p518_p10 }
 0x392   : > { %p516_p9 = pneg %p515_p7 }
 0x393   : > { %p522_p0 = por %p521_p13, %p520_p12 }
 0x395   : > { %p523_p1 = pnand %p522_p0, %p516_p9 }
 0x397   : > { %526 = shalt.err (!%p523_p1)
}
 0x398   : > { %429 = dma.vmem_to_hbm [thread:$0]  (%p649_p4), %s697_s29, 64, %s695_s5, %s333_s6  }
 0x3da   : > { %v283_v0 = vpop.permute.xlu1 %282 }
 0x3db   : > { %286 = vst.msk [vmem:[#allocation2] sm:$0x3] %vm195_vm6, %v283_v0 }
 0x3dc PF: > { %p435_p2 = scmp.ge.s32.totalorder %s577_s17, 2  ;;  %s359_s26 = sand.u32 1, %s557_s12  }
 0x3dd   : > { %s360_s27 = scalar_lea.sflag [#allocation4], %s359_s26 }
 0x3de   : > { %p432_p3 = pnand %p435_p2, %p656_p8 }
 0x3e0   : > { %552 = dma.done.wait (!%p432_p3), %s360_s27, 64  }
 0x3e1   : > { %554 = vsyncadd (!%p432_p3), %s360_s27, 4294967232  ;;  %s16_s17 = sadd.s32 1, %s577_s17   ;;  %s749_s12 = smov %s561_s13 }
 0x3e2   : > { %p13_p5 = scmp.ge.s32.totalorder %s16_s17, 4   ;;  %s750_s13 = smov %s565_s14 }
 0x3e3   : > { %s751_s14 = smov %s662_s25  ;;  %s752_s15 = smov %s573_s16 }
 0x3e4   : > { %s753_s16 = smov %s755_s20  ;;  %15 = sbr.rel (!%p13_p5) target bundleno = 4 (0x4), region = 71 }
 0x3eb   :  { %365 = vsyncpa [#allocation4], 1 }
 0x3ec   :  { %367 = vsyncpa [#allocation4 + $0x1], 1 }

</bundles_post_ra>
